<compile_context>
chip_gen: v7x
topology: tpu7x:2x2x1
jax: 0.10.0
libtpu: 0.0.40
codegen_flags: <defaults>
</compile_context>

<pallas_src>
import functools

import jax
import jax.numpy as jnp
from jax.experimental import pallas as pl
from jax.experimental.pallas import tpu as pltpu

LANES = 128


def _vmem_limit_bytes():
    """Scoped-VMEM limit adapted to the chip (96 MiB on 128-MiB chips, 48 MiB on v7x)."""
    cap = 64 * 1024 * 1024
    try:
        info = pltpu.get_tpu_info()
        cap = int(getattr(info, "vmem_capacity_bytes", cap))
    except Exception:
        pass
    return max(32 * 1024 * 1024, min(cap * 3 // 4, 96 * 1024 * 1024))


def _pick_row_tile(rows, score_bpp, vmem_limit):
    """Rows (of 128 px each) per block, budgeted against the *real* VMEM footprint.

    score_bpp: per-score bytes per pixel (= C * itemsize).  Accounts for the
    double-buffered input blocks (all heads + worst-case int32 targets), the two f32
    accumulators and ~6 (T,128) f32 temporaries of headroom.
    """
    bytes_per_px = sum(score_bpp) + 4                       # logits (all heads) + targets
    per_row = 2 * LANES * bytes_per_px + 8 * LANES * 4      # x2 double-buffer + acc/temps
    budget_rows = max(int(vmem_limit * 0.6) // per_row, 8)
    # Cap any single logits block at ~vmem_limit/24 (~4 MiB on v5e/v6e, ~2 MiB on v7x)
    # to keep pipeline granularity.
    blk_cap = max((vmem_limit // 24) // (LANES * max(score_bpp)), 8)
    t = min(budget_rows, blk_cap)
    if t >= rows:
        return rows
    if t >= 32:
        return (t // 32) * 32
    return max((t // 8) * 8, 8)


def _target_dtype(num_classes, ignore_label, t_sub):
    """Smallest target dtype whose (t_sub, 128) VMEM block stays packing-aligned."""
    if t_sub % 32 == 0 and num_classes <= 127 and -128 <= ignore_label <= 127:
        return jnp.int8
    if t_sub % 16 == 0 and num_classes <= 32767 and -32768 <= ignore_label <= 32767:
        return jnp.int16
    return jnp.int32


def _ce_kernel(*refs, n_scores, weights, ignore_label, hw, t_sub, need_pixel_mask,
               exp_bf16):
    """Grid = (batch, pixel_outer, pixel_inner); axis 2 is the reduction axis.

    refs = (targets, score_0..score_{S-1}, loss_out, cnt_out, loss_acc, cnt_acc).
    Every per-pixel value is a dense (t_sub, 128) plane; the class reduction is an
    unrolled elementwise pass over the C planes of each score block (VPU/EUP only).
    """
    t_ref = refs[0]
    x_refs = refs[1:1 + n_scores]
    loss_ref, cnt_ref = refs[1 + n_scores], refs[2 + n_scores]
    loss_acc, cnt_acc = refs[3 + n_scores], refs[4 + n_scores]

    inner = pl.program_id(2)

    @pl.when(inner == 0)
    def _init():
        loss_acc[...] = jnp.zeros_like(loss_acc)
        cnt_acc[...] = jnp.zeros_like(cnt_acc)

    t = t_ref[0].astype(jnp.int32)                          # (t_sub, 128)
    valid = t != ignore_label
    if need_pixel_mask:
        # Mask the partial last block and any clamped (duplicate) block.
        blk = pl.program_id(1) * pl.num_programs(2) + inner
        rr = jax.lax.broadcasted_iota(jnp.int32, (t_sub, LANES), 0)
        ll = jax.lax.broadcasted_iota(jnp.int32, (t_sub, LANES), 1)
        pix = (blk * t_sub + rr) * LANES + ll
        valid = jnp.logical_and(valid, pix < hw)

    cnt_acc[...] += valid.astype(jnp.float32)

    total = jnp.zeros((t_sub, LANES), jnp.float32)
    for s in range(n_scores):
        x_ref = x_refs[s]
        c = x_ref.shape[1]
        # Running max across the class planes: elementwise only, no cross-lane work.
        m = x_ref[0, 0].astype(jnp.float32)
        for k in range(1, c):
            m = jnp.maximum(m, x_ref[0, k].astype(jnp.float32))
        se = jnp.zeros((t_sub, LANES), jnp.float32)
        picked = jnp.zeros((t_sub, LANES), jnp.float32)
        for k in range(c):
            xk = x_ref[0, k].astype(jnp.float32)
            d = xk - m
            if exp_bf16[s]:
                # bf16 EUP exp (v6e/v7x); sum accumulated in f32.
                e = jnp.exp(d.astype(jnp.bfloat16)).astype(jnp.float32)
            else:
                e = jnp.exp(d)
            se = se + e
            picked = jnp.where(t == k, xk, picked)          # one-hot pick of target logit
        lse = m + jnp.log(se)
        total = total + weights[s] * (lse - picked)

    loss_acc[...] += jnp.where(valid, total, 0.0)

    @pl.when(inner == pl.num_programs(2) - 1)
    def _finalize():
        loss_ref[0, 0] = jnp.sum(loss_acc[...], keepdims=True)   # (1, 1)
        cnt_ref[0, 0] = jnp.sum(cnt_acc[...], keepdims=True)     # (1, 1)


def cross_entropy_forward(scores, target, balance_weights=(1.0,), ignore_label=-1,
                          rows_per_block=None):
    """Mirrors CrossEntropy.forward: sum_i w_i * CrossEntropyLoss(score_i, target)."""
    # TODO(synk): per-class `weight` (module ctor arg) not supported; module default is None.
    if not isinstance(scores, (list, tuple)):
        scores = [scores]                                   # config.MODEL.NUM_OUTPUTS == 1
    balance_weights = tuple(float(w) for w in balance_weights)
    assert len(balance_weights) == len(scores)

    th, tw = int(target.shape[1]), int(target.shape[2])
    resized = []
    for s in scores:
        n, c, h, w = s.shape
        if (h, w) != (th, tw):
            # TODO(synk): config.MODEL.ALIGN_CORNERS unavailable; 'bilinear' here matches
            # PyTorch align_corners=False semantics only.
            s = jax.image.resize(s, (n, c, th, tw), method="bilinear")
        resized.append(s)
    scores = resized

    n = int(scores[0].shape[0])
    hw = th * tw
    pad = (-hw) % LANES
    rows = (hw + pad) // LANES
    ignore_label = int(ignore_label)

    vmem_limit = _vmem_limit_bytes()
    score_bpp = [int(s.shape[1]) * jnp.dtype(s.dtype).itemsize for s in scores]
    if rows_per_block is None:
        t_sub = _pick_row_tile(rows, score_bpp, vmem_limit)
    else:
        t = max(8, (int(rows_per_block) // 8) * 8)
        t_sub = rows if t >= rows else t

    # NCHW -> (N, C, rows, 128): free (contiguity-preserving) when H*W % 128 == 0.
    # TODO(synk): for ragged H*W this jnp.pad is one extra HBM copy of the logits.
    logits4 = []
    for s in scores:
        c = int(s.shape[1])
        x = s.reshape(n, c, hw)
        if pad:
            x = jnp.pad(x, ((0, 0), (0, 0), (0, pad)))
        logits4.append(x.reshape(n, c, rows, LANES))

    c_max = max(int(s.shape[1]) for s in scores)
    tdt = _target_dtype(c_max, ignore_label, t_sub)
    tgt = target.astype(tdt).reshape(n, hw)
    if pad:  # padded pixels carry ignore_label -> contribute nothing
        tgt = jnp.pad(tgt, ((0, 0), (0, pad)), constant_values=ignore_label)
    tgt = tgt.reshape(n, rows, LANES)

    n_row_blocks = -(-rows // t_sub)
    n_outer = 2 if n_row_blocks >= 2 else 1                 # v7x: use both TCs even at n=1
    n_inner = -(-n_row_blocks // n_outer)
    need_pixel_mask = (rows % t_sub != 0) or (n_outer * n_inner != n_row_blocks)

    if n_outer * n_inner == n_row_blocks:
        def _blk(o, i):
            return o * n_inner + i
    else:
        def _blk(o, i):                                     # clamp fully out-of-range blocks
            return jnp.minimum(o * n_inner + i, n_row_blocks - 1)

    tgt_spec = pl.BlockSpec((1, t_sub, LANES), lambda b, o, i: (b, _blk(o, i), 0))
    score_specs = [
        pl.BlockSpec((1, int(s.shape[1]), t_sub, LANES),
                     lambda b, o, i: (b, 0, _blk(o, i), 0))
        for s in scores
    ]
    out_spec = pl.BlockSpec((1, 1, 1, 1), lambda b, o, i: (b, o, 0, 0))

    kernel = functools.partial(
        _ce_kernel,
        n_scores=len(scores),
        weights=balance_weights,
        ignore_label=ignore_label,
        hw=hw,
        t_sub=t_sub,
        need_pixel_mask=need_pixel_mask,
        exp_bf16=tuple(bool(s.dtype == jnp.bfloat16) for s in scores),
    )

    loss_part, cnt_part = pl.pallas_call(
        kernel,
        out_shape=(
            jax.ShapeDtypeStruct((n, n_outer, 1, 1), jnp.float32),
            jax.ShapeDtypeStruct((n, n_outer, 1, 1), jnp.float32),
        ),
        grid_spec=pltpu.PrefetchScalarGridSpec(
            num_scalar_prefetch=0,
            grid=(n, n_outer, n_inner),
            in_specs=[tgt_spec] + score_specs,
            out_specs=[out_spec, out_spec],
            scratch_shapes=[
                pltpu.VMEM((t_sub, LANES), jnp.float32),    # weighted loss accumulator
                pltpu.VMEM((t_sub, LANES), jnp.float32),    # valid-pixel count accumulator
            ],
        ),
        compiler_params=pltpu.CompilerParams(
            dimension_semantics=("parallel", "parallel", "arbitrary"),
            vmem_limit_bytes=vmem_limit,
        ),
    )(tgt, *logits4)

    # reduction='mean' with ignore_index: total valid (weighted) loss / number of valid
    # pixels.  (Count accumulates in f32: exact up to 2^24 valid pixels per partial.)
    return jnp.sum(loss_part) / jnp.sum(cnt_part)


def cross_entropy_loss(score, target, ignore_label=-1):
    """nn.CrossEntropyLoss(weight=None, ignore_index=ignore_label), mean over valid px."""
    return cross_entropy_forward([score], target, (1.0,), ignore_label)


def cross_entropy_ref(score, target, ignore_label=-1):
    """Pure-JAX reference mirroring nn.CrossEntropyLoss(ignore_index=ignore_label)."""
    n, c, h, w = score.shape
    logits = jnp.transpose(score, (0, 2, 3, 1)).reshape(-1, c).astype(jnp.float32)
    t = target.reshape(-1).astype(jnp.int32)
    valid = t != ignore_label
    ts = jnp.where(valid, t, 0)
    lse = jax.scipy.special.logsumexp(logits, axis=-1)
    picked = jnp.take_along_axis(logits, ts[:, None], axis=-1)[:, 0]
    losses = jnp.where(valid, lse - picked, 0.0)
    return jnp.sum(losses) / jnp.sum(valid)


if __name__ == "__main__":
    key = jax.random.PRNGKey(0)
    k1, k2, k3, k4, k5, k6, k7 = jax.random.split(key, 7)

    # --- 1/2: module-sized tests (batch=2, C=4, 16x16), single- and multi-output ------
    n, c, h, w = 2, 4, 16, 16
    score0 = jax.random.normal(k1, (n, c, h, w), dtype=jnp.float32)
    score1 = jax.random.normal(k4, (n, c, h, w), dtype=jnp.float32)
    target = jax.random.randint(k2, (n, h, w), 0, c)
    target = jnp.where(jax.random.uniform(k3, (n, h, w)) < 0.1, -1, target).astype(jnp.int32)

    loss_single = jax.block_until_ready(cross_entropy_forward(score0, target))
    ref_single = cross_entropy_ref(score0, target)
    assert jnp.allclose(loss_single, ref_single, rtol=1e-4, atol=1e-4), (loss_single, ref_single)

    bw = (0.4, 1.0)   # config.LOSS.BALANCE_WEIGHTS for the 2-output case
    loss_multi = jax.block_until_ready(
        cross_entropy_forward([score0, score1], target, balance_weights=bw))
    ref_multi = bw[0] * cross_entropy_ref(score0, target) + bw[1] * cross_entropy_ref(score1, target)
    assert jnp.allclose(loss_multi, ref_multi, rtol=1e-4, atol=1e-4), (loss_multi, ref_multi)

    # --- 3: multi-block reduction, partial last block + clamped duplicate block --------
    h3 = w3 = 48
    s3 = jax.random.normal(k5, (2, c, h3, w3), dtype=jnp.float32)
    t3 = jax.random.randint(k6, (2, h3, w3), 0, c)
    t3 = jnp.where(jax.random.uniform(k7, (2, h3, w3)) < 0.1, -1, t3).astype(jnp.int32)
    loss3 = jax.block_until_ready(cross_entropy_forward(s3, t3, rows_per_block=8))
    ref3 = cross_entropy_ref(s3, t3)
    assert jnp.allclose(loss3, ref3, rtol=1e-4, atol=1e-4), (loss3, ref3)

    # --- 4: bf16 logits (bf16 EUP exp), int8 targets, n=1, pixel-parallel outer axis ---
    s4 = jax.random.normal(k1, (1, c, 128, 64), dtype=jnp.float32).astype(jnp.bfloat16)
    t4 = jax.random.randint(k2, (1, 128, 64), 0, c).astype(jnp.int32)
    loss4 = jax.block_until_ready(cross_entropy_forward(s4, t4, rows_per_block=32))
    ref4 = cross_entropy_ref(s4, t4)
    assert jnp.allclose(loss4, ref4, rtol=2e-2, atol=2e-2), (loss4, ref4)

    # --- 5: ragged H*W (pad path) -------------------------------------------------------
    s5 = jax.random.normal(k4, (2, c, 20, 19), dtype=jnp.float32)
    t5 = jax.random.randint(k5, (2, 20, 19), 0, c).astype(jnp.int32)
    loss5 = jax.block_until_ready(cross_entropy_forward(s5, t5))
    ref5 = cross_entropy_ref(s5, t5)
    assert jnp.allclose(loss5, ref5, rtol=1e-4, atol=1e-4), (loss5, ref5)

    print("KERNEL_OK")
</pallas_src>

<mosaic_0001>
module attributes {stable_mosaic.version = 11 : i64} {
  func.func @_ce_kernel(%arg0: i32, %arg1: i32, %arg2: i32, %arg3: memref<1x2x128xi32, #tpu.memory_space<vmem>>, %arg4: memref<1x4x2x128xf32, #tpu.memory_space<vmem>>, %arg5: memref<1x1x1x1xf32, #tpu.memory_space<vmem>>, %arg6: memref<1x1x1x1xf32, #tpu.memory_space<vmem>>, %arg7: memref<2x128xf32, #tpu.memory_space<vmem>>, %arg8: memref<2x128xf32, #tpu.memory_space<vmem>>) attributes {dimension_semantics = [#tpu.dimension_semantics<parallel>, #tpu.dimension_semantics<parallel>, #tpu.dimension_semantics<arbitrary>], iteration_bounds = array<i64: 2, 1, 1>, scalar_prefetch = 0 : i64, scratch_operands = 2 : i64, tpu.core_type = #tpu.core_type<tc>, window_params = [{transform_indices = @transform_0, window_bounds = array<i64: 1, 2, 128>}, {transform_indices = @transform_1, window_bounds = array<i64: 1, 4, 2, 128>}, {transform_indices = @transform_2, window_bounds = array<i64: 1, 1, 1, 1>}, {transform_indices = @transform_3, window_bounds = array<i64: 1, 1, 1, 1>}]} {
    %c0_i32 = arith.constant 0 : i32
    %0 = arith.cmpi eq, %arg2, %c0_i32 : i32
    %1 = arith.extui %0 : i1 to i32
    %c0_i32_0 = arith.constant 0 : i32
    %2 = arith.cmpi ne, %1, %c0_i32_0 : i32
    scf.if %2 {
      %cst_47 = arith.constant 0.000000e+00 : f32
      %72 = vector.broadcast %cst_47 : f32 to vector<2x128xf32>
      %c0_48 = arith.constant 0 : index
      %c0_49 = arith.constant 0 : index
      %73 = vector.load %arg7[%c0_48, %c0_49] : memref<2x128xf32, #tpu.memory_space<vmem>>, vector<2x128xf32>
      tpu.vector_store %arg7[%c0_48, %c0_49], %72 {strides = array<i32>} : memref<2x128xf32, #tpu.memory_space<vmem>>, vector<2x128xf32>,
      %cst_50 = arith.constant 0.000000e+00 : f32
      %74 = vector.broadcast %cst_50 : f32 to vector<2x128xf32>
      %c0_51 = arith.constant 0 : index
      %c0_52 = arith.constant 0 : index
      %75 = vector.load %arg8[%c0_51, %c0_52] : memref<2x128xf32, #tpu.memory_space<vmem>>, vector<2x128xf32>
      tpu.vector_store %arg8[%c0_51, %c0_52], %74 {strides = array<i32>} : memref<2x128xf32, #tpu.memory_space<vmem>>, vector<2x128xf32>,
    } else {
    }
    %c0 = arith.constant 0 : index
    %c0_1 = arith.constant 0 : index
    %c0_2 = arith.constant 0 : index
    %3 = vector.load %arg3[%c0, %c0_1, %c0_2] : memref<1x2x128xi32, #tpu.memory_space<vmem>>, vector<1x2x128xi32>
    %4 = vector.shape_cast %3 : vector<1x2x128xi32> to vector<2x128xi32>
    %c-1_i32 = arith.constant -1 : i32
    %5 = vector.broadcast %c-1_i32 : i32 to vector<2x128xi32>
    %6 = arith.cmpi ne, %4, %5 : vector<2x128xi32>
    %c0_3 = arith.constant 0 : index
    %c0_4 = arith.constant 0 : index
    %7 = vector.load %arg8[%c0_3, %c0_4] : memref<2x128xf32, #tpu.memory_space<vmem>>, vector<2x128xf32>
    %8 = arith.extui %6 : vector<2x128xi1> to vector<2x128xi32>
    %9 = arith.sitofp %8 : vector<2x128xi32> to vector<2x128xf32>
    %10 = arith.addf %7, %9 : vector<2x128xf32>
    %c0_5 = arith.constant 0 : index
    %c0_6 = arith.constant 0 : index
    %11 = vector.load %arg8[%c0_5, %c0_6] : memref<2x128xf32, #tpu.memory_space<vmem>>, vector<2x128xf32>
    tpu.vector_store %arg8[%c0_5, %c0_6], %10 {strides = array<i32>} : memref<2x128xf32, #tpu.memory_space<vmem>>, vector<2x128xf32>,
    %cst = arith.constant 0.000000e+00 : f32
    %12 = vector.broadcast %cst : f32 to vector<2x128xf32>
    %c0_7 = arith.constant 0 : index
    %c0_8 = arith.constant 0 : index
    %c0_9 = arith.constant 0 : index
    %c0_10 = arith.constant 0 : index
    %13 = vector.load %arg4[%c0_7, %c0_8, %c0_9, %c0_10] : memref<1x4x2x128xf32, #tpu.memory_space<vmem>>, vector<1x1x2x128xf32>
    %14 = vector.shape_cast %13 : vector<1x1x2x128xf32> to vector<2x128xf32>
    %c0_11 = arith.constant 0 : index
    %c1 = arith.constant 1 : index
    %c0_12 = arith.constant 0 : index
    %c0_13 = arith.constant 0 : index
    %15 = vector.load %arg4[%c0_11, %c1, %c0_12, %c0_13] : memref<1x4x2x128xf32, #tpu.memory_space<vmem>>, vector<1x1x2x128xf32>
    %16 = vector.shape_cast %15 : vector<1x1x2x128xf32> to vector<2x128xf32>
    %17 = arith.maximumf %14, %16 : vector<2x128xf32>
    %c0_14 = arith.constant 0 : index
    %c2 = arith.constant 2 : index
    %c0_15 = arith.constant 0 : index
    %c0_16 = arith.constant 0 : index
    %18 = vector.load %arg4[%c0_14, %c2, %c0_15, %c0_16] : memref<1x4x2x128xf32, #tpu.memory_space<vmem>>, vector<1x1x2x128xf32>
    %19 = vector.shape_cast %18 : vector<1x1x2x128xf32> to vector<2x128xf32>
    %20 = arith.maximumf %17, %19 : vector<2x128xf32>
    %c0_17 = arith.constant 0 : index
    %c3 = arith.constant 3 : index
    %c0_18 = arith.constant 0 : index
    %c0_19 = arith.constant 0 : index
    %21 = vector.load %arg4[%c0_17, %c3, %c0_18, %c0_19] : memref<1x4x2x128xf32, #tpu.memory_space<vmem>>, vector<1x1x2x128xf32>
    %22 = vector.shape_cast %21 : vector<1x1x2x128xf32> to vector<2x128xf32>
    %23 = arith.maximumf %20, %22 : vector<2x128xf32>
    %cst_20 = arith.constant 0.000000e+00 : f32
    %24 = vector.broadcast %cst_20 : f32 to vector<2x128xf32>
    %cst_21 = arith.constant 0.000000e+00 : f32
    %25 = vector.broadcast %cst_21 : f32 to vector<2x128xf32>
    %c0_22 = arith.constant 0 : index
    %c0_23 = arith.constant 0 : index
    %c0_24 = arith.constant 0 : index
    %c0_25 = arith.constant 0 : index
    %26 = vector.load %arg4[%c0_22, %c0_23, %c0_24, %c0_25] : memref<1x4x2x128xf32, #tpu.memory_space<vmem>>, vector<1x1x2x128xf32>
    %27 = vector.shape_cast %26 : vector<1x1x2x128xf32> to vector<2x128xf32>
    %28 = arith.subf %27, %23 : vector<2x128xf32>
    %29 = math.exp %28 : vector<2x128xf32>
    %30 = arith.addf %24, %29 : vector<2x128xf32>
    %c0_i32_26 = arith.constant 0 : i32
    %31 = vector.broadcast %c0_i32_26 : i32 to vector<2x128xi32>
    %32 = arith.cmpi eq, %4, %31 : vector<2x128xi32>
    %33 = arith.select %32, %27, %25 : vector<2x128xi1>, vector<2x128xf32>
    %c0_27 = arith.constant 0 : index
    %c1_28 = arith.constant 1 : index
    %c0_29 = arith.constant 0 : index
    %c0_30 = arith.constant 0 : index
    %34 = vector.load %arg4[%c0_27, %c1_28, %c0_29, %c0_30] : memref<1x4x2x128xf32, #tpu.memory_space<vmem>>, vector<1x1x2x128xf32>
    %35 = vector.shape_cast %34 : vector<1x1x2x128xf32> to vector<2x128xf32>
    %36 = arith.subf %35, %23 : vector<2x128xf32>
    %37 = math.exp %36 : vector<2x128xf32>
    %38 = arith.addf %30, %37 : vector<2x128xf32>
    %c1_i32 = arith.constant 1 : i32
    %39 = vector.broadcast %c1_i32 : i32 to vector<2x128xi32>
    %40 = arith.cmpi eq, %4, %39 : vector<2x128xi32>
    %41 = arith.select %40, %35, %33 : vector<2x128xi1>, vector<2x128xf32>
    %c0_31 = arith.constant 0 : index
    %c2_32 = arith.constant 2 : index
    %c0_33 = arith.constant 0 : index
    %c0_34 = arith.constant 0 : index
    %42 = vector.load %arg4[%c0_31, %c2_32, %c0_33, %c0_34] : memref<1x4x2x128xf32, #tpu.memory_space<vmem>>, vector<1x1x2x128xf32>
    %43 = vector.shape_cast %42 : vector<1x1x2x128xf32> to vector<2x128xf32>
    %44 = arith.subf %43, %23 : vector<2x128xf32>
    %45 = math.exp %44 : vector<2x128xf32>
    %46 = arith.addf %38, %45 : vector<2x128xf32>
    %c2_i32 = arith.constant 2 : i32
    %47 = vector.broadcast %c2_i32 : i32 to vector<2x128xi32>
    %48 = arith.cmpi eq, %4, %47 : vector<2x128xi32>
    %49 = arith.select %48, %43, %41 : vector<2x128xi1>, vector<2x128xf32>
    %c0_35 = arith.constant 0 : index
    %c3_36 = arith.constant 3 : index
    %c0_37 = arith.constant 0 : index
    %c0_38 = arith.constant 0 : index
    %50 = vector.load %arg4[%c0_35, %c3_36, %c0_37, %c0_38] : memref<1x4x2x128xf32, #tpu.memory_space<vmem>>, vector<1x1x2x128xf32>
    %51 = vector.shape_cast %50 : vector<1x1x2x128xf32> to vector<2x128xf32>
    %52 = arith.subf %51, %23 : vector<2x128xf32>
    %53 = math.exp %52 : vector<2x128xf32>
    %54 = arith.addf %46, %53 : vector<2x128xf32>
    %c3_i32 = arith.constant 3 : i32
    %55 = vector.broadcast %c3_i32 : i32 to vector<2x128xi32>
    %56 = arith.cmpi eq, %4, %55 : vector<2x128xi32>
    %57 = arith.select %56, %51, %49 : vector<2x128xi1>, vector<2x128xf32>
    %58 = math.log %54 : vector<2x128xf32>
    %59 = arith.addf %23, %58 : vector<2x128xf32>
    %60 = arith.subf %59, %57 : vector<2x128xf32>
    %cst_39 = arith.constant 1.000000e+00 : f32
    %61 = vector.broadcast %cst_39 : f32 to vector<2x128xf32>
    %62 = arith.mulf %61, %60 : vector<2x128xf32>
    %63 = arith.addf %12, %62 : vector<2x128xf32>
    %c0_40 = arith.constant 0 : index
    %c0_41 = arith.constant 0 : index
    %64 = vector.load %arg7[%c0_40, %c0_41] : memref<2x128xf32, #tpu.memory_space<vmem>>, vector<2x128xf32>
    %cst_42 = arith.constant 0.000000e+00 : f32
    %65 = vector.broadcast %cst_42 : f32 to vector<2x128xf32>
    %66 = arith.select %6, %63, %65 : vector<2x128xi1>, vector<2x128xf32>
    %67 = arith.addf %64, %66 : vector<2x128xf32>
    %c0_43 = arith.constant 0 : index
    %c0_44 = arith.constant 0 : index
    %68 = vector.load %arg7[%c0_43, %c0_44] : memref<2x128xf32, #tpu.memory_space<vmem>>, vector<2x128xf32>
    tpu.vector_store %arg7[%c0_43, %c0_44], %67 {strides = array<i32>} : memref<2x128xf32, #tpu.memory_space<vmem>>, vector<2x128xf32>,
    %c0_i32_45 = arith.constant 0 : i32
    %69 = arith.cmpi eq, %arg2, %c0_i32_45 : i32
    %70 = arith.extui %69 : i1 to i32
    %c0_i32_46 = arith.constant 0 : i32
    %71 = arith.cmpi ne, %70, %c0_i32_46 : i32
    scf.if %71 {
      %c0_47 = arith.constant 0 : index
      %c0_48 = arith.constant 0 : index
      %72 = vector.load %arg7[%c0_47, %c0_48] : memref<2x128xf32, #tpu.memory_space<vmem>>, vector<2x128xf32>
      %73 = vector.shape_cast %72 : vector<2x128xf32> to vector<1x2x128xf32>
      %cst_49 = arith.constant dense<0.000000e+00> : vector<1xf32>
      %74 = vector.multi_reduction <add>, %73, %cst_49 [1, 2] : vector<1x2x128xf32> to vector<1xf32>
      %75 = vector.shape_cast %74 : vector<1xf32> to vector<1x1x1xf32>
      %76 = vector.extract %75[0, 0, 0] : f32 from vector<1x1x1xf32>
      %77 = vector.broadcast %76 : f32 to vector<1x1xf32>
      %c0_50 = arith.constant 0 : index
      %c0_51 = arith.constant 0 : index
      %c0_52 = arith.constant 0 : index
      %c0_53 = arith.constant 0 : index
      %78 = vector.load %arg5[%c0_50, %c0_51, %c0_52, %c0_53] : memref<1x1x1x1xf32, #tpu.memory_space<vmem>>, vector<1x1x1x1xf32>
      %79 = vector.shape_cast %78 : vector<1x1x1x1xf32> to vector<1x1xf32>
      %80 = vector.shape_cast %77 : vector<1x1xf32> to vector<1x1x1x1xf32>
      tpu.vector_store %arg5[%c0_50, %c0_51, %c0_52, %c0_53], %80 {strides = array<i32>} : memref<1x1x1x1xf32, #tpu.memory_space<vmem>>, vector<1x1x1x1xf32>,
      %c0_54 = arith.constant 0 : index
      %c0_55 = arith.constant 0 : index
      %81 = vector.load %arg8[%c0_54, %c0_55] : memref<2x128xf32, #tpu.memory_space<vmem>>, vector<2x128xf32>
      %82 = vector.shape_cast %81 : vector<2x128xf32> to vector<1x2x128xf32>
      %cst_56 = arith.constant dense<0.000000e+00> : vector<1xf32>
      %83 = vector.multi_reduction <add>, %82, %cst_56 [1, 2] : vector<1x2x128xf32> to vector<1xf32>
      %84 = vector.shape_cast %83 : vector<1xf32> to vector<1x1x1xf32>
      %85 = vector.extract %84[0, 0, 0] : f32 from vector<1x1x1xf32>
      %86 = vector.broadcast %85 : f32 to vector<1x1xf32>
      %c0_57 = arith.constant 0 : index
      %c0_58 = arith.constant 0 : index
      %c0_59 = arith.constant 0 : index
      %c0_60 = arith.constant 0 : index
      %87 = vector.load %arg6[%c0_57, %c0_58, %c0_59, %c0_60] : memref<1x1x1x1xf32, #tpu.memory_space<vmem>>, vector<1x1x1x1xf32>
      %88 = vector.shape_cast %87 : vector<1x1x1x1xf32> to vector<1x1xf32>
      %89 = vector.shape_cast %86 : vector<1x1xf32> to vector<1x1x1x1xf32>
      tpu.vector_store %arg6[%c0_57, %c0_58, %c0_59, %c0_60], %89 {strides = array<i32>} : memref<1x1x1x1xf32, #tpu.memory_space<vmem>>, vector<1x1x1x1xf32>,
    } else {
    }
    return
  }
  func.func @transform_0(%arg0: i32, %arg1: i32, %arg2: i32) -> (i32, i32, i32) {
    %c1_i32 = arith.constant 1 : i32
    %0 = arith.muli %arg1, %c1_i32 : i32
    %1 = arith.addi %0, %arg2 : i32
    %c0_i32 = arith.constant 0 : i32
    %c0_i32_0 = arith.constant 0 : i32
    return %arg0, %1, %c0_i32 : i32, i32, i32
  }
  func.func @transform_1(%arg0: i32, %arg1: i32, %arg2: i32) -> (i32, i32, i32, i32) {
    %c1_i32 = arith.constant 1 : i32
    %0 = arith.muli %arg1, %c1_i32 : i32
    %1 = arith.addi %0, %arg2 : i32
    %c0_i32 = arith.constant 0 : i32
    %c0_i32_0 = arith.constant 0 : i32
    %c0_i32_1 = arith.constant 0 : i32
    return %arg0, %c0_i32, %1, %c0_i32_0 : i32, i32, i32, i32
  }
  func.func @transform_2(%arg0: i32, %arg1: i32, %arg2: i32) -> (i32, i32, i32, i32) {
    %c0_i32 = arith.constant 0 : i32
    %c0_i32_0 = arith.constant 0 : i32
    %c0_i32_1 = arith.constant 0 : i32
    return %arg0, %arg1, %c0_i32, %c0_i32_0 : i32, i32, i32, i32
  }
  func.func @transform_3(%arg0: i32, %arg1: i32, %arg2: i32) -> (i32, i32, i32, i32) {
    %c0_i32 = arith.constant 0 : i32
    %c0_i32_0 = arith.constant 0 : i32
    %c0_i32_1 = arith.constant 0 : i32
    return %arg0, %arg1, %c0_i32, %c0_i32_0 : i32, i32, i32, i32
  }
}

</mosaic_0001>

<bundles_post_ra>
// kernel: tpu_custom_call.1
= control target key start
LH: loop header
LB: loop body
LE: loop exit
PB: predicated region body
PF: predicated region fallthrough
CT: control target
= control target key end

     0   :  { %9 = vsyncpa [#allocation5], 0  ;;  %s928_s0 = inlined_call_operand.hbm [shape: s32[2,2,128], index: 0, kind: input, shape index: {}]   ;;  %s929_s1 = inlined_call_operand.hbm [shape: f32[2,4,2,128], index: 1, kind: input, shape index: {}]   ;;  %s930_s2 = inlined_call_operand.vmem [shape: f32[2,1,1,1], index: 2, kind: output, shape index: {0}]   ;;  %s931_s3 = inlined_call_operand.vmem [shape: f32[2,1,1,1], index: 3, kind: output, shape index: {1}]  }
   0x1   :  { %11 = vsyncpa [#allocation5 + $0x1], 0 }
   0x2   :  { %12 = vsyncpa [#allocation7], 0 }
   0x3   :  { %14 = vsyncpa [#allocation7 + $0x1], 0  ;;  %s749_s12 = smov 0   ;;  %s751_s13 = smov 0  }
   0x4   :  { %s753_s14 = smov 0   ;;  %s755_s15 = smov 0  }
   0x5   :  { %s757_s16 = smov 0   ;;  %s759_s17 = smov 0  }
   0x6 LB: > { %s512_s18 = sadd.s32 4294967295, %s722_s17   ;;  %s39_s19 = sadd.s32 1, %s718_s16  ;;  %s722_s17 = sphi %s759_s17, %s20_s17   ;;  %s718_s16 = sphi %s757_s16, %s944_s16   ;;  %s714_s15 = sphi %s755_s15, %s943_s15   ;;  %s710_s14 = sphi %s753_s14, %s942_s14   ;;  %s706_s13 = sphi %s751_s13, %s941_s13   ;;  %s702_s12 = sphi %s749_s12, %s940_s12  }
   0x7   : > { %p41_p0 = scmp.ge.s32.totalorder %s39_s19, 2  ;;  %s50_s20 = sadd.s32 1, %s710_s14 }
   0x8   : > { %p57_p1 = scmp.ne.s32.totalorder %s710_s14, %s706_s13  ;;  %p58_p2 = scmp.eq.s32.totalorder %s722_s17, 0 }
   0x9   : > { %s946_s19 = smov (%p41_p0, %s39_s19), 0  ;;  %p63_p4 = scmp.ne.s32.totalorder %s706_s13, %s702_s12 }
   0xa   : > { %p785_p3 = por %p58_p2, %p57_p1  ;;  %s45_s22 = ssub.s32 %s718_s16, %s946_s19 }
   0xb   : > { %p64_p5 = scmp.eq.s32.totalorder %s512_s18, 0  ;;  %p48_p6 = scmp.eq.s32.totalorder %s45_s22, 0 }
   0xc   : > { %p546_p8 = scmp.lt.s32.totalorder %s722_s17, 2  ;;  %s801_s25 = sand.u32 1, %s710_s14  }
   0xd   : > { %p792_p7 = por %p64_p5, %p63_p4  ;;  %s517_s26 = sshll.u32 %s718_s16, 5 }
   0xe   : > { %s798_s24 = scalar_select %p48_p6, %s710_s14, %s50_s20  }
   0xf   : > { %s934_s23 = scalar_select %p792_p7, 1, 0 }
  0x10   : > { %s516_s27 = sshll.u32 %s801_s25, 1  ;;  %s808_s30 = scalar_lea.hbm %s928_s0, %s517_s26 }
  0x11   : > { %s177_s4 = scalar_lea.vmem [#allocation4], %s516_s27  ;;  %p812_p9 = pnand %p546_p8, %p785_p3 }
  0x12   : > { %s186_s5 = sshll.u32 %s177_s4, 4  ;;  %s174_s7 = scalar_lea.sflag [#allocation5], %s801_s25  ;;  %s816_s5 = int_to_ptr.vmem [resolvable:$true] %s186_s5 }
  0x13   : > { %s608_s8 = scalar_lea.hbm %s808_s30, 32  ;;  %p610_p13 = pneg %p812_p9 }
  0x14   : > { %p609_p12 = scmp.ne.s32.totalorder %s808_s30, %s608_s8  ;;  %s613_s11 = scalar_lea.hbm %s928_s0, 64 }
  0x15   : > { %p614_p2 = scmp.lt.u32.totalorder %s808_s30, %s928_s0  ;;  %p615_p3 = scmp.lt.u32.totalorder %s613_s11, %s608_s8 }
  0x16   : > { %p611_p0 = pnand %p610_p13, %p609_p12  ;;  %p617_p5 = scmp.lt.u32.totalorder %s608_s8, %s808_s30 }
  0x17   : > { %p616_p4 = por %p615_p3, %p614_p2 }
  0x18   : > { %p612_p1 = pneg %p611_p0 }
  0x19   : > { %p618_p6 = por %p617_p5, %p616_p4 }
  0x1b   : > { %p619_p8 = pnand %p618_p6, %p612_p1 }
  0x1d   : > { %622 = shalt.err (!%p619_p8)
}
  0x1e   : > { %s623_s20 = scalar_lea.vmem %s816_s5, 32  ;;  %s724_s21 = smov [#allocation4]  }
  0x1f   : > { %p624_p12 = scmp.ne.s32.totalorder %s816_s5, %s623_s20  ;;  %s628_s22 = sshll.u32 %s724_s21, 4  ;;  %s629_s22 = int_to_ptr.vmem [resolvable:$false] %s628_s22 }
  0x20   : > { %s630_s26 = scalar_lea.vmem %s629_s22, 64  ;;  %p631_p11 = scmp.lt.s32.totalorder %s816_s5, %s629_s22 }
  0x21   : > { %p626_p0 = pnand %p624_p12, %p610_p13  ;;  %p632_p2 = scmp.lt.s32.totalorder %s630_s26, %s623_s20 }
  0x23   : > { %p627_p10 = pneg %p626_p0  ;;  %p633_p3 = por %p632_p2, %p631_p11 }
  0x25   : > { %p634_p4 = pnand %p633_p3, %p627_p10 }
  0x27   : > { %637 = shalt.err (!%p634_p4)
}
  0x28   : > { %542 = dma.hbm_to_vmem [thread:$0]  (!%p812_p9), %s808_s30, 32, %s816_s5, %s174_s7  }
  0x29   : > { %p936_p1 = scmp.lt.s32.totalorder %s722_s17, 3  ;;  %p937_p5 = scmp.ge.s32.totalorder %s722_s17, 1 }
  0x2a   : > { %s518_s28 = sshll.u32 %s801_s25, 3  ;;  %s530_s29 = sshll.u32 %s718_s16, 7 }
  0x2b   : > { %p850_p6 = pnand %p937_p5, %p936_p1  ;;  %s859_s9 = scalar_lea.hbm %s929_s1, %s530_s29 }
  0x2c   : > { %s197_s10 = scalar_lea.vmem [#allocation6], %s518_s28  ;;  %s194_s30 = scalar_lea.sflag [#allocation7], %s801_s25 }
  0x2d   : > { %s206_s11 = sshll.u32 %s197_s10, 4  ;;  %s638_s5 = scalar_lea.hbm %s859_s9, 128  ;;  %s861_s11 = int_to_ptr.vmem [resolvable:$true] %s206_s11 }
  0x2e   : > { %p639_p10 = scmp.ne.s32.totalorder %s859_s9, %s638_s5  ;;  %s643_s18 = scalar_lea.hbm %s929_s1, 256 }
  0x2f   : > { %p644_p12 = scmp.lt.u32.totalorder %s859_s9, %s929_s1  ;;  %p645_p0 = scmp.lt.u32.totalorder %s643_s18, %s638_s5 }
  0x30   : > { %p641_p11 = pnand %p639_p10, %p610_p13  ;;  %p647_p3 = scmp.lt.u32.totalorder %s638_s5, %s859_s9 }
  0x31   : > { %p646_p2 = por %p645_p0, %p644_p12 }
  0x32   : > { %p642_p8 = pneg %p641_p11 }
  0x33   : > { %p648_p4 = por %p647_p3, %p646_p2 }
  0x35   : > { %p649_p1 = pnand %p648_p4, %p642_p8 }
  0x37   : > { %652 = shalt.err (!%p649_p1)
}
  0x38   : > { %s653_s22 = scalar_lea.vmem %s861_s11, 128  ;;  %s725_s26 = smov [#allocation6]  }
  0x39   : > { %p654_p5 = scmp.ne.s32.totalorder %s861_s11, %s653_s22  ;;  %s658_s28 = sshll.u32 %s725_s26, 4  ;;  %s659_s28 = int_to_ptr.vmem [resolvable:$false] %s658_s28 }
  0x3a   : > { %s660_s29 = scalar_lea.vmem %s659_s28, 256  ;;  %p661_p7 = scmp.lt.s32.totalorder %s861_s11, %s659_s28 }
  0x3b   : > { %p656_p10 = pnand %p654_p5, %p610_p13  ;;  %p662_p12 = scmp.lt.s32.totalorder %s660_s29, %s653_s22 }
  0x3d   : > { %p657_p11 = pneg %p656_p10  ;;  %p663_p0 = por %p662_p12, %p661_p7 }
  0x3f   : > { %p664_p2 = pnand %p663_p0, %p657_p11 }
  0x41   : > { %667 = shalt.err (!%p664_p2)
}
  0x42   : > { %s726_s4 = smov 32   ;;  %s727_s8 = smov 2  }
  0x43   : > { %545 = dma.hbm_to_vmem [thread:$0]  (!%p812_p9), %s859_s9, 128, %s861_s11, %s194_s30, %s726_s4, %s726_s4, %s727_s8  }
  0x44   : > { %218 = sbr.rel (%p850_p6) target bundleno = 347 (0x15b), region = 28  ;;  %s220_s10 = sand.u32 (!%p850_p6), 1, %s706_s13  }
  0x45   : > { %s522_s5 = sshll.u32 (!%p850_p6), %s220_s10, 1  ;;  %s221_s7 = scalar_lea.sflag (!%p850_p6), [#allocation5], %s220_s10 }
  0x46   : > { %s224_s12 = scalar_lea.vmem (!%p850_p6), [#allocation4], %s522_s5  ;;  %p939_p7 = scmp.ne.s32.totalorder (!%p850_p6), %s934_s23, 0 }
  0x4b   : > { %693 = dma.done.wait (%p939_p7), %s221_s7, 32  }
  0x4c   : > { %695 = vsyncadd (%p939_p7), %s221_s7, 4294967264  ;;  %s523_s18 = sshll.u32 %s220_s10, 3  ;;  %s230_s20 = scalar_lea.sflag [#allocation7], %s220_s10 }
  0x4d   : > { %s233_s6 = scalar_lea.vmem [#allocation6], %s523_s18 }
  0x4e   : > { %697 = dma.done.wait (%p939_p7), %s230_s20, 128  }
  0x4f   : > { %699 = vsyncadd (%p939_p7), %s230_s20, 4294967168  ;;  %v728_v0 = vmov 0.0   ;;  %v295_v1 = vld [vmem:[%s233_s6] sm:$0x3]  ;;  %v525_v2 = vld [vmem:[%s233_s6 + $0x2] sm:$0x3] }
  0x50   : > { %286 = vst [vmem:[#allocation2] sm:$0x3] %v728_v0  ;;  %287 = vst [vmem:[#allocation3] sm:$0x3] %v728_v0  ;;  %v288_v3 = vld [vmem:[%s224_s12] sm:$0x3]  ;;  %v298_v4 = vmax.f32 %v295_v1, %v525_v2 }
  0x51   : > { %v526_v5 = vld [vmem:[%s233_s6 + $0x4] sm:$0x3]  ;;  %vm289_vm0 = vcmp.ne.s32.totalorder %v288_v3, 4294967295  ;;  %v527_v6 = vld [vmem:[%s233_s6 + $0x6] sm:$0x3]  ;;  %vm309_vm1 = vcmp.eq.s32.totalorder %v288_v3, 0 }
  0x52   : > { %v301_v7 = vmax.f32 %v298_v4, %v526_v5  ;;  %v524_v9 = vsel %vm289_vm0, 1.0, %v728_v0  ;;  %v310_v27 = vsel %vm309_vm1, %v295_v1, 0.0  ;;  %vm315_vm2 = vcmp.eq.s32.totalorder %v288_v3, 1  ;;  %p270_p9 = scmp.lt.s32.totalorder %s714_s15, 1 }
  0x53   : > { %v316_v28 = vsel %vm315_vm2, %v525_v2, %v310_v27  ;;  %vm321_vm3 = vcmp.eq.s32.totalorder %v288_v3, 2  ;;  %vm327_vm4 = vcmp.eq.s32.totalorder %v288_v3, 3  ;;  %vm342_vm5 = vcmask 1041408  }
  0x54   : > { %v304_v11 = vmax.f32 %v301_v7, %v527_v6  ;;  %v322_v29 = vsel %vm321_vm3, %v526_v5, %v316_v28  ;;  %s948_s15 = smov (!%p270_p9, %s714_s15), 1  ;;  %vm354_vm6 = vcmask 0  }
  0x55   : > { %v328_v32 = vsel %vm327_vm4, %v527_v6, %v322_v29  ;;  %s275_s27 = scalar_lea.vmem %s930_s2, %s948_s15  ;;  %s281_s21 = scalar_lea.vmem %s931_s3, %s948_s15 }
  0x56   : > { %v305_v12 = vsub.f32 %v295_v1, %v304_v11  ;;  %v311_v13 = vsub.f32 %v525_v2, %v304_v11  ;;  %v317_v14 = vsub.f32 %v526_v5, %v304_v11  ;;  %v323_v15 = vsub.f32 %v527_v6, %v304_v11 }
  0x57   : > { %v290_v8 = vld [vmem:[#allocation3] sm:$0x3]  ;;  %v334_v35 = vld [vmem:[#allocation2] sm:$0x3] }
  0x58   : > { %v293_v10 = vadd.f32 %v524_v9, %v290_v8  ;;  %v306_v16 = vmul.f32 1.442695, %v305_v12  ;;  %v312_v17 = vmul.f32 1.442695, %v311_v13  ;;  %v318_v18 = vmul.f32 1.442695, %v317_v14 }
  0x59   : > { %v324_v19 = vmul.f32 1.442695, %v323_v15 }
  0x5a   : > { %294 = vst [vmem:[#allocation3] sm:$0x3] %v293_v10  ;;  %598 = vpow2.f32 %v306_v16 }
  0x5b   : > { %600 = vpow2.f32 %v312_v17 }
  0x5c   : > { %602 = vpow2.f32 %v318_v18 }
  0x5d   : > { %604 = vpow2.f32 %v324_v19 }
  0x61   : > { %v356_v39 = vld [vmem:[#allocation3] sm:$0x3] }
  0x62   : > { %v357_v41 = vsel %vm342_vm5, %v356_v39, 0.0 }
  0x64   : > { %v599_v20 = vpop.eup %598 }
  0x65   : > { %v601_v21 = vpop.eup %600 }
  0x66   : > { %v603_v22 = vpop.eup %602  ;;  %v314_v23 = vadd.f32 %v601_v21, %v599_v20 }
  0x67   : > { %v605_v24 = vpop.eup %604 }
  0x68   : > { %v320_v25 = vadd.f32 %v603_v22, %v314_v23 }
  0x6a   : > { %v326_v26 = vadd.f32 %v605_v24, %v320_v25 }
  0x6c   : > { %606 = vlog2.f32 %v326_v26 }
  0x76   : > { %v607_v30 = vpop.eup %606 }
  0x77   : > { %v330_v31 = vmul.f32 0.6931472, %v607_v30 }
  0x79   : > { %v331_v33 = vadd.f32 %v330_v31, %v304_v11 }
  0x7b   : > { %v332_v34 = vsub.f32 %v331_v33, %v328_v32 }
  0x7d   : > { %v335_v36 = vsel %vm289_vm0, %v332_v34, 0.0 }
  0x7e   : > { %v336_v37 = vadd.f32 %v335_v36, %v334_v35 }
  0x80   : > { %337 = vst [vmem:[#allocation2] sm:$0x3] %v336_v37 }
  0x87   : > { %v341_v38 = vld [vmem:[#allocation2] sm:$0x3] }
  0x88   : > { %v343_v40 = vsel %vm342_vm5, %v341_v38, 0.0 }
  0x89   : > { %344 = vadd.xlane.f32.xlu0 %v343_v40 }
  0x8d   : > { %358 = vadd.xlane.f32.xlu0 %v357_v41 }
 0x116   : > { %v345_v42 = vpop.xlane.xlu0 %344 }
 0x117   : > { %v346_v43 = vrot.slane %v345_v42, 4 }
 0x119   : > { %v347_v44 = vadd.f32 %v346_v43, %v345_v42 }
 0x11a   : > { %v359_v45 = vpop.xlane.xlu0 %358 }
 0x11b   : > { %v348_v46 = vrot.slane %v347_v44, 2  ;;  %v360_v47 = vrot.slane %v359_v45, 4 }
 0x11d   : > { %v361_v48 = vadd.f32 %v360_v47, %v359_v45  ;;  %v349_v49 = vadd.f32 %v348_v46, %v347_v44 }
 0x11f   : > { %v362_v50 = vrot.slane %v361_v48, 2  ;;  %v350_v51 = vrot.slane %v349_v49, 1 }
 0x121   : > { %v363_v52 = vadd.f32 %v362_v50, %v361_v48  ;;  %v351_v53 = vadd.f32 %v350_v51, %v349_v49 }
 0x123   : > { %531 = vpush %v351_v53  ;;  %v364_v54 = vrot.slane %v363_v52, 1 }
 0x125   : > { %v365_v55 = vadd.f32 %v364_v54, %v363_v52 }
 0x127   : > { %533 = vpush %v365_v55 }
 0x154   : > { %s532_s9 = spop %531 }
 0x155   : > { %v353_v56 = vstv %s532_s9 }
 0x156   : > { %355 = vst.msk [vmem:[%s275_s27] sm:$0x1] %vm354_vm6, %v353_v56 }
 0x158   : > { %s534_s22 = spop %533 }
 0x159   : > { %v367_v57 = vstv %s534_s22 }
 0x15a   : > { %368 = vst.msk [vmem:[%s281_s21] sm:$0x1] %vm354_vm6, %v367_v57 }
 0x15b PF: > { %s20_s17 = sadd.s32 1, %s722_s17   ;;  %s940_s12 = smov %s706_s13 }
 0x15c   : > { %p17_p13 = scmp.ge.s32.totalorder %s20_s17, 4   ;;  %s941_s13 = smov %s710_s14 }
 0x15d   : > { %s942_s14 = smov %s798_s24  ;;  %s943_s15 = smov %s718_s16 }
 0x15e   : > { %s944_s16 = smov %s946_s19  ;;  %19 = sbr.rel (!%p17_p13) target bundleno = 6 (0x6), region = 104 }
 0x165   :  { %410 = vsyncpa [#allocation5], 1 }
 0x166   :  { %412 = vsyncpa [#allocation5 + $0x1], 1 }
 0x167   :  { %413 = vsyncpa [#allocation7], 1 }
 0x168   :  { %415 = vsyncpa [#allocation7 + $0x1], 1 }

</bundles_post_ra>
